<compile_context>
chip_gen: v7x
topology: tpu7x:2x2x1
jax: 0.10.0
libtpu: 0.0.40
codegen_flags: <defaults>
</compile_context>

<pallas_src>
import functools

import jax
import jax.numpy as jnp
from jax.experimental import pallas as pl
from jax.experimental.pallas import tpu as pltpu

DIMS = [13, 13, 13, 10, 5, 1]   # real layer sizes of the PyTorch module
N_LAYERS = len(DIMS) - 1        # 5 linear layers
P = 16                          # padded feature width (multiple of 8 sublanes)
TILE_B = 1024                   # max batch columns (lanes) per grid step


def _mlp_kernel(x_ref, w_ref, b_ref, o_ref):
    """One batch tile of the fused 5-layer MLP, feature-major.

    x_ref: (P, tile_b)        input tile, feature rows 13..15 are zero
    w_ref: (N_LAYERS, P, P)   zero-padded weights, W[l] is (out, in)
    b_ref: (N_LAYERS, P, 1)   zero-padded biases
    o_ref: (1, tile_b)        sigmoid output row (lane-dense)
    """
    h = x_ref[...]
    for layer in range(N_LAYERS):
        z = jnp.dot(w_ref[layer], h,
                    preferred_element_type=jnp.float32) + b_ref[layer]
        # ReLU on all but the last layer; zero-padded feature rows stay 0.
        h = jnp.maximum(z, 0.0) if layer < N_LAYERS - 1 else z
    # Only row 0 of the last layer is the real logit.
    o_ref[...] = jax.nn.sigmoid(h[:1, :])


def init_params(key):
    """PyTorch-style init: W (out, in), b (out,), uniform(+-1/sqrt(fan_in))."""
    params = []
    for i in range(N_LAYERS):
        fan_in, fan_out = DIMS[i], DIMS[i + 1]
        key, kw, kb = jax.random.split(key, 3)
        bound = 1.0 / (fan_in ** 0.5)
        w = jax.random.uniform(kw, (fan_out, fan_in), jnp.float32, -bound, bound)
        b = jax.random.uniform(kb, (fan_out,), jnp.float32, -bound, bound)
        params.append((w, b))
    return params


def pack_params(params):
    """Pack the 10 tiny tensors into two zero-padded VMEM-resident slabs."""
    w_pack = jnp.zeros((N_LAYERS, P, P), jnp.float32)
    b_pack = jnp.zeros((N_LAYERS, P, 1), jnp.float32)
    for l, (w, b) in enumerate(params):
        o, i = w.shape
        w_pack = w_pack.at[l, :o, :i].set(w)
        b_pack = b_pack.at[l, :o, 0].set(b)
    return w_pack, b_pack


def _pick_tile_b(b):
    """Lane-tile size: whole array when B <= 128 (block == array dims is
    always legal); otherwise a multiple of 128 that is <= B and yields at
    least two grid steps so v7x can shard the 'parallel' axis across TCs."""
    if b <= 128:
        return b
    half = -(-b // 2)                      # cdiv(b, 2)
    tile = ((half + 127) // 128) * 128     # round up to a lane multiple
    return min(TILE_B, tile)


@functools.partial(jax.jit, static_argnames=("tile_b",))
def _net_forward_impl(x, w_pack, b_pack, tile_b):
    b = x.shape[0]
    # Single wrapper-side transpose+pad: (B, 13) -> feature-major (16, B).
    x_t = jnp.pad(x.T, ((0, P - DIMS[0]), (0, 0)))

    out = pl.pallas_call(
        _mlp_kernel,
        out_shape=jax.ShapeDtypeStruct((1, b), jnp.float32),
        grid=(pl.cdiv(b, tile_b),),
        in_specs=[
            pl.BlockSpec((P, tile_b), lambda i: (0, i)),          # x tile
            pl.BlockSpec((N_LAYERS, P, P), lambda i: (0, 0, 0)),  # weights (resident)
            pl.BlockSpec((N_LAYERS, P, 1), lambda i: (0, 0, 0)),  # biases (resident)
        ],
        out_specs=pl.BlockSpec((1, tile_b), lambda i: (0, i)),
        compiler_params=pltpu.CompilerParams(
            dimension_semantics=("parallel",)),
    )(x_t, w_pack, b_pack)

    # (1, B) -> (B, 1): identical linear order, free reshape (no copy/slice).
    return out.reshape(b, 1)


def net_forward(x, w_pack, b_pack):
    """x: (B, 13) float32 -> (B, 1) float32, matching Net.forward in eval mode."""
    assert x.ndim == 2 and x.shape[1] == DIMS[0]
    return _net_forward_impl(x, w_pack, b_pack, _pick_tile_b(x.shape[0]))


def net_forward_ref(x, params):
    """Pure-JAX reference of the same forward pass."""
    h = x
    for i, (w, bias) in enumerate(params):
        h = h @ w.T + bias
        if i < len(params) - 1:
            h = jnp.maximum(h, 0.0)
    return jax.nn.sigmoid(h)


if __name__ == "__main__":
    key = jax.random.PRNGKey(0)
    k_params, k_x1, k_x2 = jax.random.split(key, 3)
    params = init_params(k_params)
    w_pack, b_pack = pack_params(params)

    # Small batch: single whole-array block (B <= 128 path).
    x1 = jax.random.normal(k_x1, (8, 13), jnp.float32)
    y1 = jax.block_until_ready(net_forward(x1, w_pack, b_pack))
    y1_ref = net_forward_ref(x1, params)
    assert y1.shape == (8, 1)
    assert jnp.allclose(y1, y1_ref, atol=1e-5, rtol=1e-5)

    # Gridded path: 2 "parallel" tiles of 512 lanes; ragged tail clipped by Pallas.
    x2 = jax.random.normal(k_x2, (1000, 13), jnp.float32)
    y2 = jax.block_until_ready(net_forward(x2, w_pack, b_pack))
    y2_ref = net_forward_ref(x2, params)
    assert y2.shape == (1000, 1)
    assert jnp.allclose(y2, y2_ref, atol=1e-5, rtol=1e-5)

    print("KERNEL_OK")
</pallas_src>

<mosaic_0001>
module attributes {stable_mosaic.version = 11 : i64} {
  func.func @_mlp_kernel(%arg0: i32, %arg1: memref<16x8xf32, #tpu.memory_space<vmem>>, %arg2: memref<5x16x16xf32, #tpu.memory_space<vmem>>, %arg3: memref<5x16x1xf32, #tpu.memory_space<vmem>>, %arg4: memref<1x8xf32, #tpu.memory_space<vmem>>) attributes {dimension_semantics = [#tpu.dimension_semantics<parallel>], iteration_bounds = array<i64: 1>, scalar_prefetch = 0 : i64, scratch_operands = 0 : i64, tpu.core_type = #tpu.core_type<tc>, window_params = [{transform_indices = @transform_0, window_bounds = array<i64: 16, 8>}, {pipeline_mode = #tpu.pipeline_mode<synchronous>, transform_indices = @transform_1, window_bounds = array<i64: 5, 16, 16>}, {pipeline_mode = #tpu.pipeline_mode<synchronous>, transform_indices = @transform_2, window_bounds = array<i64: 5, 16, 1>}, {transform_indices = @transform_3, window_bounds = array<i64: 1, 8>}]} {
    %c0 = arith.constant 0 : index
    %c0_0 = arith.constant 0 : index
    %0 = vector.load %arg1[%c0, %c0_0] : memref<16x8xf32, #tpu.memory_space<vmem>>, vector<16x8xf32>
    %c0_1 = arith.constant 0 : index
    %c0_2 = arith.constant 0 : index
    %c0_3 = arith.constant 0 : index
    %1 = vector.load %arg2[%c0_1, %c0_2, %c0_3] : memref<5x16x16xf32, #tpu.memory_space<vmem>>, vector<1x16x16xf32>
    %2 = vector.shape_cast %1 : vector<1x16x16xf32> to vector<16x16xf32>
    %cst = arith.constant dense<0.000000e+00> : vector<16x8xf32>
    %3 = tpu.matmul %2, %0, %cst {dimension_numbers = #tpu.dot_dimension_numbers<[1], [0], [0], [1], [0, 0, 1, 1], [], []>} : vector<16x16xf32>, vector<16x8xf32>, vector<16x8xf32> -> vector<16x8xf32>
    %c0_4 = arith.constant 0 : index
    %c0_5 = arith.constant 0 : index
    %c0_6 = arith.constant 0 : index
    %4 = vector.load %arg3[%c0_4, %c0_5, %c0_6] : memref<5x16x1xf32, #tpu.memory_space<vmem>>, vector<1x16x1xf32>
    %5 = vector.shape_cast %4 : vector<1x16x1xf32> to vector<16x1xf32>
    %6 = vector.broadcast %5 : vector<16x1xf32> to vector<16x8xf32>
    %7 = arith.addf %3, %6 : vector<16x8xf32>
    %cst_7 = arith.constant 0.000000e+00 : f32
    %8 = vector.broadcast %cst_7 : f32 to vector<16x8xf32>
    %9 = arith.maximumf %7, %8 : vector<16x8xf32>
    %c1 = arith.constant 1 : index
    %c0_8 = arith.constant 0 : index
    %c0_9 = arith.constant 0 : index
    %10 = vector.load %arg2[%c1, %c0_8, %c0_9] : memref<5x16x16xf32, #tpu.memory_space<vmem>>, vector<1x16x16xf32>
    %11 = vector.shape_cast %10 : vector<1x16x16xf32> to vector<16x16xf32>
    %cst_10 = arith.constant dense<0.000000e+00> : vector<16x8xf32>
    %12 = tpu.matmul %11, %9, %cst_10 {dimension_numbers = #tpu.dot_dimension_numbers<[1], [0], [0], [1], [0, 0, 1, 1], [], []>} : vector<16x16xf32>, vector<16x8xf32>, vector<16x8xf32> -> vector<16x8xf32>
    %c1_11 = arith.constant 1 : index
    %c0_12 = arith.constant 0 : index
    %c0_13 = arith.constant 0 : index
    %13 = vector.load %arg3[%c1_11, %c0_12, %c0_13] : memref<5x16x1xf32, #tpu.memory_space<vmem>>, vector<1x16x1xf32>
    %14 = vector.shape_cast %13 : vector<1x16x1xf32> to vector<16x1xf32>
    %15 = vector.broadcast %14 : vector<16x1xf32> to vector<16x8xf32>
    %16 = arith.addf %12, %15 : vector<16x8xf32>
    %cst_14 = arith.constant 0.000000e+00 : f32
    %17 = vector.broadcast %cst_14 : f32 to vector<16x8xf32>
    %18 = arith.maximumf %16, %17 : vector<16x8xf32>
    %c2 = arith.constant 2 : index
    %c0_15 = arith.constant 0 : index
    %c0_16 = arith.constant 0 : index
    %19 = vector.load %arg2[%c2, %c0_15, %c0_16] : memref<5x16x16xf32, #tpu.memory_space<vmem>>, vector<1x16x16xf32>
    %20 = vector.shape_cast %19 : vector<1x16x16xf32> to vector<16x16xf32>
    %cst_17 = arith.constant dense<0.000000e+00> : vector<16x8xf32>
    %21 = tpu.matmul %20, %18, %cst_17 {dimension_numbers = #tpu.dot_dimension_numbers<[1], [0], [0], [1], [0, 0, 1, 1], [], []>} : vector<16x16xf32>, vector<16x8xf32>, vector<16x8xf32> -> vector<16x8xf32>
    %c2_18 = arith.constant 2 : index
    %c0_19 = arith.constant 0 : index
    %c0_20 = arith.constant 0 : index
    %22 = vector.load %arg3[%c2_18, %c0_19, %c0_20] : memref<5x16x1xf32, #tpu.memory_space<vmem>>, vector<1x16x1xf32>
    %23 = vector.shape_cast %22 : vector<1x16x1xf32> to vector<16x1xf32>
    %24 = vector.broadcast %23 : vector<16x1xf32> to vector<16x8xf32>
    %25 = arith.addf %21, %24 : vector<16x8xf32>
    %cst_21 = arith.constant 0.000000e+00 : f32
    %26 = vector.broadcast %cst_21 : f32 to vector<16x8xf32>
    %27 = arith.maximumf %25, %26 : vector<16x8xf32>
    %c3 = arith.constant 3 : index
    %c0_22 = arith.constant 0 : index
    %c0_23 = arith.constant 0 : index
    %28 = vector.load %arg2[%c3, %c0_22, %c0_23] : memref<5x16x16xf32, #tpu.memory_space<vmem>>, vector<1x16x16xf32>
    %29 = vector.shape_cast %28 : vector<1x16x16xf32> to vector<16x16xf32>
    %cst_24 = arith.constant dense<0.000000e+00> : vector<16x8xf32>
    %30 = tpu.matmul %29, %27, %cst_24 {dimension_numbers = #tpu.dot_dimension_numbers<[1], [0], [0], [1], [0, 0, 1, 1], [], []>} : vector<16x16xf32>, vector<16x8xf32>, vector<16x8xf32> -> vector<16x8xf32>
    %c3_25 = arith.constant 3 : index
    %c0_26 = arith.constant 0 : index
    %c0_27 = arith.constant 0 : index
    %31 = vector.load %arg3[%c3_25, %c0_26, %c0_27] : memref<5x16x1xf32, #tpu.memory_space<vmem>>, vector<1x16x1xf32>
    %32 = vector.shape_cast %31 : vector<1x16x1xf32> to vector<16x1xf32>
    %33 = vector.broadcast %32 : vector<16x1xf32> to vector<16x8xf32>
    %34 = arith.addf %30, %33 : vector<16x8xf32>
    %cst_28 = arith.constant 0.000000e+00 : f32
    %35 = vector.broadcast %cst_28 : f32 to vector<16x8xf32>
    %36 = arith.maximumf %34, %35 : vector<16x8xf32>
    %c4 = arith.constant 4 : index
    %c0_29 = arith.constant 0 : index
    %c0_30 = arith.constant 0 : index
    %37 = vector.load %arg2[%c4, %c0_29, %c0_30] : memref<5x16x16xf32, #tpu.memory_space<vmem>>, vector<1x16x16xf32>
    %38 = vector.shape_cast %37 : vector<1x16x16xf32> to vector<16x16xf32>
    %cst_31 = arith.constant dense<0.000000e+00> : vector<16x8xf32>
    %39 = tpu.matmul %38, %36, %cst_31 {dimension_numbers = #tpu.dot_dimension_numbers<[1], [0], [0], [1], [0, 0, 1, 1], [], []>} : vector<16x16xf32>, vector<16x8xf32>, vector<16x8xf32> -> vector<16x8xf32>
    %c4_32 = arith.constant 4 : index
    %c0_33 = arith.constant 0 : index
    %c0_34 = arith.constant 0 : index
    %40 = vector.load %arg3[%c4_32, %c0_33, %c0_34] : memref<5x16x1xf32, #tpu.memory_space<vmem>>, vector<1x16x1xf32>
    %41 = vector.shape_cast %40 : vector<1x16x1xf32> to vector<16x1xf32>
    %42 = vector.broadcast %41 : vector<16x1xf32> to vector<16x8xf32>
    %43 = arith.addf %39, %42 : vector<16x8xf32>
    %44 = vector.extract_strided_slice %43 {offsets = [0, 0], sizes = [1, 8], strides = [1, 1]} : vector<16x8xf32> to vector<1x8xf32>
    %45 = arith.negf %44 : vector<1x8xf32>
    %46 = math.exp %45 : vector<1x8xf32>
    %cst_35 = arith.constant 1.000000e+00 : f32
    %47 = vector.broadcast %cst_35 : f32 to vector<1x8xf32>
    %48 = arith.addf %47, %46 : vector<1x8xf32>
    %49 = arith.divf %47, %48 : vector<1x8xf32>
    %c0_36 = arith.constant 0 : index
    %c0_37 = arith.constant 0 : index
    %50 = vector.load %arg4[%c0_36, %c0_37] : memref<1x8xf32, #tpu.memory_space<vmem>>, vector<1x8xf32>
    tpu.vector_store %arg4[%c0_36, %c0_37], %49 {strides = array<i32>} : memref<1x8xf32, #tpu.memory_space<vmem>>, vector<1x8xf32>,
    return
  }
  func.func @transform_0(%arg0: i32) -> (i32, i32) {
    %c0_i32 = arith.constant 0 : i32
    %c0_i32_0 = arith.constant 0 : i32
    return %c0_i32, %arg0 : i32, i32
  }
  func.func @transform_1(%arg0: i32) -> (i32, i32, i32) {
    %c0_i32 = arith.constant 0 : i32
    %c0_i32_0 = arith.constant 0 : i32
    %c0_i32_1 = arith.constant 0 : i32
    %c0_i32_2 = arith.constant 0 : i32
    return %c0_i32, %c0_i32_0, %c0_i32_1 : i32, i32, i32
  }
  func.func @transform_2(%arg0: i32) -> (i32, i32, i32) {
    %c0_i32 = arith.constant 0 : i32
    %c0_i32_0 = arith.constant 0 : i32
    %c0_i32_1 = arith.constant 0 : i32
    %c0_i32_2 = arith.constant 0 : i32
    return %c0_i32, %c0_i32_0, %c0_i32_1 : i32, i32, i32
  }
  func.func @transform_3(%arg0: i32) -> (i32, i32) {
    %c0_i32 = arith.constant 0 : i32
    %c0_i32_0 = arith.constant 0 : i32
    return %c0_i32, %arg0 : i32, i32
  }
}

</mosaic_0001>

<bundles_post_ra>
// kernel: _net_forward_impl.1
= control target key start
LH: loop header
LB: loop body
LE: loop exit
PB: predicated region body
PF: predicated region fallthrough
CT: control target
= control target key end

     0   :  { %vm31_vm0 = vcmask 130048   ;;  %v663_v4 = vmov 0   ;;  %s770_s0 = inlined_call_operand.vmem [shape: f32[16,8], index: 0, kind: input, shape index: {}]   ;;  %s771_s1 = inlined_call_operand.vmem [shape: f32[5,16,16], index: 1, kind: input, shape index: {}]   ;;  %s772_s2 = inlined_call_operand.vmem [shape: f32[5,16,1], index: 2, kind: input, shape index: {}]   ;;  %s773_s3 = inlined_call_operand.hbm [shape: f32[1,8], index: 3, kind: output, shape index: {}]  }
   0x1   :  { %v15_v0 = vld [vmem:[%s770_s0] sm:$0xff]  ;;  %v16_v1 = vld [vmem:[%s770_s0 + $0x8] sm:$0xff]  ;;  %633 = vset.pattern.permute.xlu0 %v663_v4  ;;  %634 = vset.pattern.permute.xlu1 %v663_v4 }
   0x2   :  { %v17_v2 = vld [vmem:[%s771_s1] sm:$0xff]  ;;  %v611_v3 = vpack.c.bf16 %v16_v1, %v15_v0  ;;  %v20_v6 = vld [vmem:[%s772_s2 + $0x8] sm:$0xff] }
   0x3   :  { %580 = vmatprep.mubr.msk.f32.mxu0 %vm31_vm0, %v17_v2  ;;  %v19_v5 = vld [vmem:[%s772_s2] sm:$0xff] }
   0x4   :  { %23 = vperm.xlu0 %633, %v19_v5   ;;  %612 = vmatprep.subr.bf16.mxu0 %v611_v3 }
   0x5   :  { %8 = vsyncpa [#allocation3], 0  ;;  %614 = vmatpush3.bf16.msra.mxu0 %v611_v3  ;;  %v18_v7 = vld [vmem:[%s771_s1 + $0x8] sm:$0xff]  ;;  %v539_v8 = vld [vmem:[%s772_s2 + $0x20] sm:$0xff]  ;;  %s664_s24 = smov [#allocation2]   ;;  %vm513_vm1 = vcmask 57344  }
   0x6   :  { %v545_v9 = vld [vmem:[%s772_s2 + $0x30] sm:$0xff]  ;;  %v551_v10 = vld [vmem:[%s772_s2 + $0x40] sm:$0xff]  ;;  %v534_v13 = vld [vmem:[%s772_s2 + $0x18] sm:$0xff]  ;;  %s521_s25 = sshll.u32 %s664_s24, 4  ;;  %s522_s25 = int_to_ptr.vmem [resolvable:$true] %s521_s25 }
   0x7   :  { %v531_v11 = vld [vmem:[%s771_s1 + $0x10] sm:$0xff]  ;;  %v540_v14 = vld [vmem:[%s772_s2 + $0x28] sm:$0xff]  ;;  %v546_v15 = vld [vmem:[%s772_s2 + $0x38] sm:$0xff]  ;;  %s639_s26 = scalar_lea.vmem %s522_s25, 16  ;;  %p644_p1 = scmp.lt.s32.totalorder %s522_s25, %s522_s25 }
   0x8   :  { %28 = vperm.xlu0 %633, %v20_v6   ;;  %581 = vmatmul.mubr.msk.f32.vlgmr.msra.gmra.mrb[0].mxu0 %vm31_vm0, %v18_v7  ;;  %v533_v12 = vld [vmem:[%s772_s2 + $0x10] sm:$0xff]  ;;  %v532_v25 = vld [vmem:[%s771_s1 + $0x18] sm:$0xff]  ;;  %v537_v26 = vld [vmem:[%s771_s1 + $0x20] sm:$0xff]  ;;  %p640_p0 = scmp.ne.s32.totalorder %s522_s25, %s639_s26 }
   0x9   :  { %587 = vmatprep.mubr.msk.f32.mxu1 %vm31_vm0, %v531_v11  ;;  %123 = vperm.xlu1 %634, %v533_v12   ;;  %v538_v36 = vld [vmem:[%s771_s1 + $0x28] sm:$0xff]  ;;  %v543_v37 = vld [vmem:[%s771_s1 + $0x30] sm:$0xff]  ;;  %v544_v47 = vld [vmem:[%s771_s1 + $0x38] sm:$0xff] }
   0xa   :  { %594 = vmatprep.mubr.msk.f32.mxu0 %vm31_vm0, %v537_v26  ;;  %v549_v48 = vld [vmem:[%s771_s1 + $0x40] sm:$0xff]  ;;  %v550_v58 = vld [vmem:[%s771_s1 + $0x48] sm:$0xff]  ;;  %s643_s1 = scalar_lea.vmem %s522_s25, 32 }
   0xb   :  { %p645_p2 = scmp.lt.s32.totalorder %s643_s1, %s639_s26 }
   0xc   :  { %222 = vperm.xlu0 %633, %v539_v8  }
   0xd   :  { %128 = vperm.xlu1 %634, %v534_v13   ;;  %p646_p3 = por %p645_p2, %p644_p1 }
   0xf   :  { %p647_p4 = pnand %p646_p3, %p640_p0 }
  0x10   :  { %321 = vperm.xlu0 %633, %v545_v9  }
  0x11   :  { %227 = vperm.xlu1 %634, %v540_v14  }
  0x14   :  { %420 = vperm.xlu0 %633, %v551_v10  }
  0x15   :  { %326 = vperm.xlu1 %634, %v546_v15  }
  0x83   :  { %v24_v16 = vpop.permute.xlu0 %23 }
  0x87   :  { %v29_v17 = vpop.permute.xlu0 %28 }
  0x88   :  { %v124_v27 = vpop.permute.xlu1 %123 }
  0x8b   :  { %v223_v40 = vpop.permute.xlu0 %222 }
  0x8c   :  { %v129_v28 = vpop.permute.xlu1 %128 }
  0x8f   :  { %v322_v51 = vpop.permute.xlu0 %321 }
  0x90   :  { %v228_v38 = vpop.permute.xlu1 %227 }
  0x93   :  { %v421_v60 = vpop.permute.xlu0 %420 }
  0x94   :  { %v327_v49 = vpop.permute.xlu1 %326 }
  0xdb   :  { %v582_v18 = vpop.f32.mrb[0].mxu0 }
  0xdc   :  { %v110_v19 = vadd.f32 %v582_v18, %v29_v17  ;;  %v104_v20 = vpop.f32.mrb[1].mxu0 }
  0xdd   :  { %v105_v21 = vadd.f32 %v104_v20, %v24_v16 }
  0xde   :  { %v114_v22 = vmax.f32 %v110_v19, 0.0 }
  0xdf   :  { %v113_v23 = vmax.f32 %v105_v21, 0.0 }
  0xe1   :  { %v615_v24 = vpack.c.bf16 %v114_v22, %v113_v23 }
  0xe3   :  { %616 = vmatprep.subr.bf16.mxu1 %v615_v24 }
  0xe4   :  { %618 = vmatpush3.bf16.msra.mxu1 %v615_v24 }
  0xe7   :  { %588 = vmatmul.mubr.msk.f32.vlgmr.msra.gmra.mrb[0].mxu1 %vm31_vm0, %v532_v25 }
  0xe8   :  { %601 = vmatprep.mubr.msk.f32.mxu1 %vm31_vm0, %v543_v37 }
 0x1ba   :  { %v589_v29 = vpop.f32.mrb[0].mxu1 }
 0x1bb   :  { %v209_v30 = vadd.f32 %v589_v29, %v129_v28  ;;  %v203_v31 = vpop.f32.mrb[1].mxu1 }
 0x1bc   :  { %v204_v32 = vadd.f32 %v203_v31, %v124_v27 }
 0x1bd   :  { %v213_v33 = vmax.f32 %v209_v30, 0.0 }
 0x1be   :  { %v212_v34 = vmax.f32 %v204_v32, 0.0 }
 0x1c0   :  { %v619_v35 = vpack.c.bf16 %v213_v33, %v212_v34 }
 0x1c2   :  { %620 = vmatprep.subr.bf16.mxu0 %v619_v35 }
 0x1c3   :  { %622 = vmatpush3.bf16.msra.mxu0 %v619_v35 }
 0x1c6   :  { %595 = vmatmul.mubr.msk.f32.vlgmr.msra.gmra.mrb[2].mxu0 %vm31_vm0, %v538_v36 }
 0x1c7   :  { %608 = vmatprep.mubr.msk.f32.mxu0 %vm31_vm0, %v549_v48 }
 0x299   :  { %v596_v39 = vpop.f32.mrb[2].mxu0 }
 0x29a   :  { %v308_v41 = vadd.f32 %v596_v39, %v228_v38  ;;  %v302_v42 = vpop.f32.mrb[3].mxu0 }
 0x29b   :  { %v303_v43 = vadd.f32 %v302_v42, %v223_v40 }
 0x29c   :  { %v312_v44 = vmax.f32 %v308_v41, 0.0 }
 0x29d   :  { %v311_v45 = vmax.f32 %v303_v43, 0.0 }
 0x29f   :  { %v623_v46 = vpack.c.bf16 %v312_v44, %v311_v45 }
 0x2a1   :  { %624 = vmatprep.subr.bf16.mxu1 %v623_v46 }
 0x2a2   :  { %626 = vmatpush3.bf16.msra.mxu1 %v623_v46 }
 0x2a5   :  { %602 = vmatmul.mubr.msk.f32.vlgmr.msra.gmra.mrb[2].mxu1 %vm31_vm0, %v544_v47 }
 0x378   :  { %v603_v50 = vpop.f32.mrb[2].mxu1 }
 0x379   :  { %v407_v52 = vadd.f32 %v603_v50, %v327_v49  ;;  %v401_v53 = vpop.f32.mrb[3].mxu1 }
 0x37a   :  { %v402_v54 = vadd.f32 %v401_v53, %v322_v51 }
 0x37b   :  { %v411_v55 = vmax.f32 %v407_v52, 0.0 }
 0x37c   :  { %v410_v56 = vmax.f32 %v402_v54, 0.0 }
 0x37e   :  { %v627_v57 = vpack.c.bf16 %v411_v55, %v410_v56 }
 0x380   :  { %628 = vmatprep.subr.bf16.mxu0 %v627_v57 }
 0x381   :  { %630 = vmatpush3.bf16.msra.mxu0 %v627_v57 }
 0x384   :  { %609 = vmatmul.mubr.msk.f32.vlgmr.msra.gmra.mrb[4].mxu0 %vm31_vm0, %v550_v58 }
 0x457   :  { %v610_v59 = vpop.f32.mrb[4].mxu0 }
 0x458   :  { %v499_v61 = vpop.f32.mrb[5].mxu0 }
 0x459   :  { %v500_v62 = vadd.f32 %v499_v61, %v421_v60 }
 0x45b   :  { %v555_v63 = vmul.f32 -1.442695, %v500_v62 }
 0x45d   :  { %635 = vpow2.f32 %v555_v63 }
 0x467   :  { %v636_v0 = vpop.eup %635 }
 0x468   :  { %v510_v1 = vadd.f32 1.0, %v636_v0 }
 0x46a   :  { %637 = vrcp.f32 %v510_v1 }
 0x474   :  { %v638_v2 = vpop.eup %637 }
 0x475   :  { %514 = vst.msk [vmem:[#allocation2] sm:$0x1] %vm513_vm1, %v638_v2 }
 0x476   :  { %650 = shalt.err (!%p647_p4)
}
 0x477   :  { %s651_s29 = scalar_lea.hbm %s773_s3, 16 }
 0x478   :  { %p652_p5 = scmp.ne.s32.totalorder %s773_s3, %s651_s29  ;;  %p655_p6 = scmp.lt.u32.totalorder %s651_s29, %s773_s3 }
 0x47a   :  { %p657_p7 = pnand %p655_p6, %p652_p5 }
 0x47c   :  { %660 = shalt.err (!%p657_p7)
}
 0x47d   :  { %524 = dma.vmem_to_hbm [thread:$0]  %s522_s25, 16, %s773_s3, [#allocation3]  }
 0x47e   :  { %661 = dma.done.wait [#allocation3], 16  }
 0x47f   :  { %662 = vsyncadd [#allocation3], 4294967280 }
 0x480   :  { %528 = vsyncpa [#allocation3], 1 }

</bundles_post_ra>
